<compile_context>
chip_gen: v5e
topology: v5e:2x2
jax: 0.10.0
libtpu: 0.0.40
codegen_flags: <defaults>
</compile_context>

<pallas_src>
import functools

import jax
import jax.numpy as jnp
from jax.experimental import pallas as pl
from jax.experimental.pallas import tpu as pltpu


# ---------------------------------------------------------------------------
# Helpers
# ---------------------------------------------------------------------------

_VMEM_LIMIT = 48 * 1024 * 1024  # safe on v7x (64 MiB phys) and plenty on v5e/v6e


def _round_up(x, m):
    return ((x + m - 1) // m) * m


def _pick_tile(dim, max_tile, align):
    """Largest t <= max_tile with t % align == 0 and dim % t == 0, else None."""
    best = None
    t = align
    while t <= max_tile:
        if dim % t == 0:
            best = t
        t += align
    return best


# ---------------------------------------------------------------------------
# Pallas kernels
# ---------------------------------------------------------------------------

def _matmul_kernel(a_ref, b_ref, bias_ref, o_ref, acc_ref, *, relu):
    @pl.when(pl.program_id(2) == 0)
    def _():
        acc_ref[...] = jnp.zeros_like(acc_ref)

    acc_ref[...] += jnp.dot(a_ref[...], b_ref[...],
                            preferred_element_type=jnp.float32)

    @pl.when(pl.program_id(2) == pl.num_programs(2) - 1)
    def _():
        y = acc_ref[...] + bias_ref[...]
        if relu:
            y = jnp.maximum(y, 0.0)
        o_ref[...] = y.astype(o_ref.dtype)


def pallas_matmul(a, b, bias=None, relu=False):
    """a:(M,K), b:(K,N) -> (M,N) f32.  bf16 operands, f32 accumulation,
    fused bias + optional ReLU epilogue."""
    M, K = a.shape
    K2, N = b.shape
    assert K == K2
    a = a.astype(jnp.bfloat16)
    b = b.astype(jnp.bfloat16)
    if bias is None:
        bias = jnp.zeros((N,), jnp.float32)
    bias = bias.astype(jnp.float32).reshape(1, N)

    # --- tile selection (full-dim blocks are legal; avoid host padding) -----
    if M <= 256:
        tm, Mp = M, M
    else:
        tm = _pick_tile(M, 256, 8)
        if tm is None:
            tm = 256
            Mp = _round_up(M, tm)
            a = jnp.pad(a, ((0, Mp - M), (0, 0)))
        else:
            Mp = M
    tk = _pick_tile(K, 1024, 128) or K     # multiple of 128 or full K
    tn = _pick_tile(N, 512, 128) or N      # multiple of 128 or full N

    grid = (Mp // tm, N // tn, K // tk)

    out = pl.pallas_call(
        functools.partial(_matmul_kernel, relu=relu),
        out_shape=jax.ShapeDtypeStruct((Mp, N), jnp.float32),
        grid=grid,
        in_specs=[
            pl.BlockSpec((tm, tk), lambda i, j, k: (i, k)),
            pl.BlockSpec((tk, tn), lambda i, j, k: (k, j)),
            pl.BlockSpec((1, tn), lambda i, j, k: (0, j)),
        ],
        out_specs=pl.BlockSpec((tm, tn), lambda i, j, k: (i, j)),
        scratch_shapes=[pltpu.VMEM((tm, tn), jnp.float32)],
        compiler_params=pltpu.CompilerParams(
            dimension_semantics=("parallel", "parallel", "arbitrary"),
            vmem_limit_bytes=_VMEM_LIMIT,
        ),
    )(a, b, bias)
    return out[:M] if Mp != M else out


def _attn_kernel(q_ref, k_ref, v_ref, o_ref):
    # q: (G, Nq, D) bf16 (scale already folded into the Q projection weights)
    q = q_ref[...]
    k = k_ref[...]
    v = v_ref[...]
    s = jnp.einsum('gqd,gkd->gqk', q, k, preferred_element_type=jnp.float32)
    m = jnp.max(s, axis=-1, keepdims=True)
    p = jnp.exp(s - m)
    l = jnp.sum(p, axis=-1, keepdims=True)
    o = jnp.einsum('gqk,gkd->gqd', p.astype(v.dtype), v,
                   preferred_element_type=jnp.float32)
    o_ref[...] = (o * pl.reciprocal(l, approx=True)).astype(o_ref.dtype)


def _pick_group(bh):
    for g in (8, 4, 2, 1):
        if bh % g == 0 and bh // g >= 2:
            return g
    return bh


def pallas_attention(q, k, v):
    """q:(BH,Nq,D), k/v:(BH,Nk,D) -> softmax(q k^T) v, G heads per grid step."""
    BH, Nq, D = q.shape
    _, Nk, _ = k.shape
    G = _pick_group(BH)
    q = q.astype(jnp.bfloat16)
    k = k.astype(jnp.bfloat16)
    v = v.astype(jnp.bfloat16)

    out = pl.pallas_call(
        _attn_kernel,
        out_shape=jax.ShapeDtypeStruct((BH, Nq, D), jnp.bfloat16),
        grid=(BH // G,),
        in_specs=[
            pl.BlockSpec((G, Nq, D), lambda i: (i, 0, 0)),
            pl.BlockSpec((G, Nk, D), lambda i: (i, 0, 0)),
            pl.BlockSpec((G, Nk, D), lambda i: (i, 0, 0)),
        ],
        out_specs=pl.BlockSpec((G, Nq, D), lambda i: (i, 0, 0)),
        compiler_params=pltpu.CompilerParams(
            dimension_semantics=("parallel",),
            vmem_limit_bytes=_VMEM_LIMIT,
        ),
    )(q, k, v)
    return out


# ---------------------------------------------------------------------------
# JAX glue built on the Pallas kernels
# ---------------------------------------------------------------------------

def conv2d(x, w, stride=1, padding=0, bias=None, relu=False):
    """NCHW conv via channel-last bf16 im2col + fused Pallas matmul epilogue."""
    B, C, H, W = x.shape
    Cout, Cin, kh, kw = w.shape
    assert C == Cin
    Ho = (H + 2 * padding - kh) // stride + 1
    Wo = (W + 2 * padding - kw) // stride + 1

    if kh == 1 and kw == 1 and padding == 0:
        xs = x[:, :, ::stride, ::stride]
        patches = xs.transpose(0, 2, 3, 1).reshape(B * Ho * Wo, C)
        wm = w.reshape(Cout, Cin).T
    else:
        xp = jnp.pad(x, ((0, 0), (0, 0), (padding, padding), (padding, padding)))
        xp = xp.transpose(0, 2, 3, 1).astype(jnp.bfloat16)  # NHWC, bf16
        cols = []
        for i in range(kh):
            for j in range(kw):
                cols.append(xp[:, i:i + stride * (Ho - 1) + 1:stride,
                               j:j + stride * (Wo - 1) + 1:stride, :])
        # TODO(synk): im2col still materializes kh*kw patch copies in HBM; a
        # fully fused conv kernel (grid axis over taps with a VMEM accumulator)
        # would remove this; bf16 halves the traffic vs the previous version.
        patches = jnp.stack(cols, axis=3).reshape(B * Ho * Wo, kh * kw * C)
        wm = w.transpose(0, 2, 3, 1).reshape(Cout, kh * kw * Cin).T  # tap-major

    out = pallas_matmul(patches, wm, bias=bias, relu=relu)           # (BHoWo,Cout)
    return out.reshape(B, Ho, Wo, Cout).transpose(0, 3, 1, 2)


def conv_bn(x, w, bn, stride, padding, relu=False, eps=1e-5):
    """Eval-mode BatchNorm folded into the conv weights + fused bias/ReLU."""
    scale = bn['weight'] / jnp.sqrt(bn['running_var'] + eps)
    w_f = w * scale[:, None, None, None]
    b_f = bn['bias'] - bn['running_mean'] * scale
    return conv2d(x, w_f, stride=stride, padding=padding, bias=b_f, relu=relu)


def linear(x, w, b=None, relu=False):
    """x: (..., in), w: (out, in) (torch convention)."""
    shp = x.shape
    y = pallas_matmul(x.reshape(-1, shp[-1]), w.T, bias=b, relu=relu)
    return y.reshape(shp[:-1] + (w.shape[0],))


def groupnorm(x, p, num_groups=32, eps=1e-6):
    B, C, H, W = x.shape
    xg = x.reshape(B, num_groups, C // num_groups, H, W)
    mean = xg.mean(axis=(2, 3, 4), keepdims=True)
    var = xg.var(axis=(2, 3, 4), keepdims=True)
    xg = (xg - mean) / jnp.sqrt(var + eps)
    x = xg.reshape(B, C, H, W)
    return x * p['weight'][None, :, None, None] + p['bias'][None, :, None, None]


def layernorm(x, p, eps=1e-5):
    mean = x.mean(-1, keepdims=True)
    var = x.var(-1, keepdims=True)
    return (x - mean) / jnp.sqrt(var + eps) * p['weight'] + p['bias']


def avgpool(x, k):
    B, C, H, W = x.shape
    return x.reshape(B, C, H // k, k, W // k, k).mean(axis=(3, 5))


def upsample_bilinear(x, scale):
    B, C, H, W = x.shape
    return jax.image.resize(x, (B, C, H * scale, W * scale), method='bilinear')


# --- residual block (stand-in for the user-provided spiking `block`) --------

def basic_block(x, p):
    s = p['stride']
    out = conv_bn(x, p['conv1_w'], p['bn1'], stride=s, padding=1, relu=True)
    out = conv_bn(out, p['conv2_w'], p['bn2'], stride=1, padding=1, relu=False)
    if 'sc_conv_w' in p:
        sc = conv_bn(x, p['sc_conv_w'], p['sc_bn'], stride=s, padding=0)
    else:
        sc = x
    return jax.nn.relu(out + sc)


def run_layer(x, blocks):
    for bp in blocks:
        x = basic_block(x, bp)
    return x


# --- SpatialTransformer (cross-attention fusion) -----------------------------

def _split_heads(t, heads, d_head):
    b, n, _ = t.shape
    return t.reshape(b, n, heads, d_head).transpose(0, 2, 1, 3).reshape(
        b * heads, n, d_head)


def _merge_heads(t, b, heads, d_head):
    _, n, _ = t.shape
    return t.reshape(b, heads, n, d_head).transpose(0, 2, 1, 3).reshape(
        b, n, heads * d_head)


def cross_attention(x, ctx, p, heads, d_head, self_attn):
    b = x.shape[0]
    scale = d_head ** -0.5
    if self_attn:
        # fused QKV projection (scale folded into the Q weights)
        qkv_w = jnp.concatenate([p['to_q_w'] * scale, p['to_k_w'], p['to_v_w']],
                                axis=0)
        qkv = linear(x, qkv_w)
        q, k, v = jnp.split(qkv, 3, axis=-1)
    else:
        q = linear(x, p['to_q_w'] * scale)
        kv_w = jnp.concatenate([p['to_k_w'], p['to_v_w']], axis=0)
        kv = linear(ctx, kv_w)
        k, v = jnp.split(kv, 2, axis=-1)
    qh = _split_heads(q, heads, d_head)
    kh = _split_heads(k, heads, d_head)
    vh = _split_heads(v, heads, d_head)
    o = pallas_attention(qh, kh, vh)
    o = _merge_heads(o, b, heads, d_head)
    return linear(o, p['to_out_w'], p['to_out_b'])


def feed_forward(x, p):
    h = linear(x, p['w1'], p['b1'])
    a, gate = jnp.split(h, 2, axis=-1)
    h = a * jax.nn.gelu(gate, approximate=False)   # GEGLU
    return linear(h, p['w2'], p['b2'])


def transformer_block(x, ctx, p, heads, d_head):
    h = layernorm(x, p['norm1'])
    x = cross_attention(h, h, p['attn1'], heads, d_head, self_attn=True) + x
    h = layernorm(x, p['norm2'])
    x = cross_attention(h, ctx, p['attn2'], heads, d_head, self_attn=False) + x
    h = layernorm(x, p['norm3'])
    x = feed_forward(h, p['ff']) + x
    return x


def spatial_transformer(x, ctx, p):
    heads, d_head = p['heads'], p['d_head']
    B, C, H, W = x.shape
    x_in = x
    h = groupnorm(x, p['norm'])
    h = conv2d(h, p['proj_in_w'], stride=1, padding=0, bias=p['proj_in_b'])
    h = h.reshape(B, C, H * W).transpose(0, 2, 1)            # b (h w) c
    for blk in p['blocks']:
        h = transformer_block(h, ctx, blk, heads, d_head)
    h = h.transpose(0, 2, 1).reshape(B, C, H, W)
    h = conv2d(h, p['proj_out_w'], stride=1, padding=0, bias=p['proj_out_b'])
    return h + x_in


# ---------------------------------------------------------------------------
# Full forward pass (T folded into batch: eval-mode BN, no spiking state)
# ---------------------------------------------------------------------------

def attention_resnet_forward(params, x, s1, s2, s3, s4):
    """x: (B, T, 3, H, W); s1..s4: NCHW ann-context feature maps."""
    B, T = x.shape[:2]
    s1 = avgpool(s1, 4)
    s2 = avgpool(s2, 2)

    def tokens(s):  # 'b c h w -> b (h w) c', repeated along the folded T axis
        b, c, h, w = s.shape
        return jnp.repeat(s.reshape(b, c, h * w).transpose(0, 2, 1), T, axis=0)

    s1, s2, s3, s4 = tokens(s1), tokens(s2), tokens(s3), tokens(s4)

    # reset_net(self): no-op here (see TODO at top) -> timesteps are independent
    xt = x.reshape((B * T,) + x.shape[2:])

    out = conv_bn(xt, params['conv1_w'], params['bn1'], stride=2, padding=1)
    out = run_layer(out, params['layer1'])
    out = avgpool(out, 4)
    out = spatial_transformer(out, s1, params['fusion1'])
    out = upsample_bilinear(out, 4)
    out = run_layer(out, params['layer2'])
    out = avgpool(out, 2)
    out = spatial_transformer(out, s2, params['fusion2'])
    out = upsample_bilinear(out, 2)
    out = run_layer(out, params['layer3'])
    out = spatial_transformer(out, s3, params['fusion3'])
    out = run_layer(out, params['layer4'])
    out = spatial_transformer(out, s4, params['fusion4'])
    return out.reshape((B, T) + out.shape[1:])


# ---------------------------------------------------------------------------
# Deterministic parameter construction (synthetic init, no checkpoint)
# ---------------------------------------------------------------------------

def make_params(key, width_mult=4, num_blocks=(1, 1, 1, 1), dim_head=32,
                transformer_depth=1):
    keys = iter(jax.random.split(key, 1024))

    def nk():
        return next(keys)

    def conv_w(cout, cin, k):
        std = (1.0 / (cin * k * k)) ** 0.5
        return jax.random.normal(nk(), (cout, cin, k, k), jnp.float32) * std

    def lin_w(out_f, in_f):
        std = (1.0 / in_f) ** 0.5
        return jax.random.normal(nk(), (out_f, in_f), jnp.float32) * std

    def bias_v(n):
        return jax.random.normal(nk(), (n,), jnp.float32) * 0.02

    def norm_p(c):
        return {'weight': 1.0 + 0.05 * jax.random.normal(nk(), (c,), jnp.float32),
                'bias': 0.05 * jax.random.normal(nk(), (c,), jnp.float32)}

    def bn_p(c):
        p = norm_p(c)
        p['running_mean'] = jnp.zeros((c,), jnp.float32)
        p['running_var'] = jnp.ones((c,), jnp.float32)
        return p

    def block_p(cin, planes, stride):
        p = {'conv1_w': conv_w(planes, cin, 3), 'bn1': bn_p(planes),
             'conv2_w': conv_w(planes, planes, 3), 'bn2': bn_p(planes),
             'stride': stride}
        if stride != 1 or cin != planes:
            p['sc_conv_w'] = conv_w(planes, cin, 1)
            p['sc_bn'] = bn_p(planes)
        return p

    def layer_p(cin, planes, nb, stride):
        strides = [stride] + [1] * (nb - 1)
        blocks, c = [], cin
        for s in strides:
            blocks.append(block_p(c, planes, s))
            c = planes
        return blocks, c

    def attn_p(query_dim, context_dim, inner):
        return {'to_q_w': lin_w(inner, query_dim),
                'to_k_w': lin_w(inner, context_dim),
                'to_v_w': lin_w(inner, context_dim),
                'to_out_w': lin_w(query_dim, inner),
                'to_out_b': bias_v(query_dim)}

    def fusion_p(c, ctx_dim, heads, d_head):
        inner = heads * d_head  # == c here
        blocks = []
        for _ in range(transformer_depth):
            blocks.append({
                'norm1': norm_p(inner),
                'attn1': attn_p(inner, inner, inner),
                'norm2': norm_p(inner),
                'attn2': attn_p(inner, ctx_dim, inner),
                'norm3': norm_p(inner),
                'ff': {'w1': lin_w(inner * 8, inner), 'b1': bias_v(inner * 8),
                       'w2': lin_w(inner, inner * 4), 'b2': bias_v(inner)},
            })
        # NOTE: original proj_out is zero-initialized (zero_module); we use a
        # small random init so the attention path is exercised numerically.
        return {'norm': norm_p(c),
                'proj_in_w': conv_w(inner, c, 1), 'proj_in_b': bias_v(inner),
                'blocks': blocks,
                'proj_out_w': conv_w(c, inner, 1), 'proj_out_b': bias_v(c),
                'heads': heads, 'd_head': d_head}

    in_planes = 16 * width_mult  # 64
    params = {'conv1_w': conv_w(in_planes, 3, 3), 'bn1': bn_p(64)}
    params['layer1'], c = layer_p(in_planes, in_planes, num_blocks[0], 2)   # 64
    params['layer2'], c = layer_p(c, c * 2, num_blocks[1], 2)               # 128
    params['layer3'], c = layer_p(c, c * 2, num_blocks[2], 2)               # 256
    params['layer4'], c = layer_p(c, c * 2, num_blocks[3], 2)               # 512

    in_channels = [1 * 16 * width_mult, 2 * 16 * width_mult,
                   4 * 16 * width_mult, 8 * 16 * width_mult]     # [64,128,256,512]
    context_dims = [64, 128, 256, 512]                           # resnet18 backbone
    for i in range(4):
        ch = in_channels[i]
        params[f'fusion{i + 1}'] = fusion_p(ch, context_dims[i],
                                            ch // dim_head, dim_head)
    return params


# ---------------------------------------------------------------------------

if __name__ == "__main__":
    key = jax.random.PRNGKey(0)
    kp, kx, k1, k2, k3, k4 = jax.random.split(key, 6)

    params = make_params(kp)

    B, T, H, W = 2, 2, 64, 64                        # small timestep count
    x = jax.random.normal(kx, (B, T, 3, H, W), jnp.float32)
    s1 = jax.random.normal(k1, (B, 64, 16, 16), jnp.float32)
    s2 = jax.random.normal(k2, (B, 128, 8, 8), jnp.float32)
    s3 = jax.random.normal(k3, (B, 256, 4, 4), jnp.float32)
    s4 = jax.random.normal(k4, (B, 512, 2, 2), jnp.float32)

    out = attention_resnet_forward(params, x, s1, s2, s3, s4)
    out = jax.block_until_ready(out)

    assert out.shape == (B, T, 512, 2, 2), out.shape
    assert bool(jnp.all(jnp.isfinite(out)))
    print("KERNEL_OK")
</pallas_src>

<mosaic_0001>
module attributes {stable_mosaic.version = 11 : i64} {
  func.func @_matmul_kernel(%arg0: i32, %arg1: i32, %arg2: i32, %arg3: memref<256x27xbf16, #tpu.memory_space<vmem>>, %arg4: memref<27x64xbf16, #tpu.memory_space<vmem>>, %arg5: memref<1x64xf32, #tpu.memory_space<vmem>>, %arg6: memref<256x64xf32, #tpu.memory_space<vmem>>, %arg7: memref<256x64xf32, #tpu.memory_space<vmem>>) attributes {dimension_semantics = [#tpu.dimension_semantics<parallel>, #tpu.dimension_semantics<parallel>, #tpu.dimension_semantics<arbitrary>], iteration_bounds = array<i64: 16, 1, 1>, scalar_prefetch = 0 : i64, scratch_operands = 1 : i64, tpu.core_type = #tpu.core_type<tc>, window_params = [{transform_indices = @transform_0, window_bounds = array<i64: 256, 27>}, {transform_indices = @transform_1, window_bounds = array<i64: 27, 64>}, {transform_indices = @transform_2, window_bounds = array<i64: 1, 64>}, {transform_indices = @transform_3, window_bounds = array<i64: 256, 64>}]} {
    %c0_i32 = arith.constant 0 : i32
    %0 = arith.cmpi eq, %arg2, %c0_i32 : i32
    %1 = arith.extui %0 : i1 to i32
    %c0_i32_0 = arith.constant 0 : i32
    %2 = arith.cmpi ne, %1, %c0_i32_0 : i32
    scf.if %2 {
      %cst_10 = arith.constant 0.000000e+00 : f32
      %12 = vector.broadcast %cst_10 : f32 to vector<256x64xf32>
      %c0_11 = arith.constant 0 : index
      %c0_12 = arith.constant 0 : index
      %13 = vector.load %arg7[%c0_11, %c0_12] : memref<256x64xf32, #tpu.memory_space<vmem>>, vector<256x64xf32>
      tpu.vector_store %arg7[%c0_11, %c0_12], %12 {strides = array<i32>} : memref<256x64xf32, #tpu.memory_space<vmem>>, vector<256x64xf32>,
    } else {
    }
    %c0 = arith.constant 0 : index
    %c0_1 = arith.constant 0 : index
    %3 = vector.load %arg7[%c0, %c0_1] : memref<256x64xf32, #tpu.memory_space<vmem>>, vector<256x64xf32>
    %c0_2 = arith.constant 0 : index
    %c0_3 = arith.constant 0 : index
    %4 = vector.load %arg3[%c0_2, %c0_3] : memref<256x27xbf16, #tpu.memory_space<vmem>>, vector<256x27xbf16>
    %c0_4 = arith.constant 0 : index
    %c0_5 = arith.constant 0 : index
    %5 = vector.load %arg4[%c0_4, %c0_5] : memref<27x64xbf16, #tpu.memory_space<vmem>>, vector<27x64xbf16>
    %cst = arith.constant dense<0.000000e+00> : vector<256x64xf32>
    %6 = tpu.matmul %4, %5, %cst {dimension_numbers = #tpu.dot_dimension_numbers<[1], [0], [0], [1], [0, 0, 1, 1], [], []>} : vector<256x27xbf16>, vector<27x64xbf16>, vector<256x64xf32> -> vector<256x64xf32>
    %7 = arith.addf %3, %6 : vector<256x64xf32>
    %c0_6 = arith.constant 0 : index
    %c0_7 = arith.constant 0 : index
    %8 = vector.load %arg7[%c0_6, %c0_7] : memref<256x64xf32, #tpu.memory_space<vmem>>, vector<256x64xf32>
    tpu.vector_store %arg7[%c0_6, %c0_7], %7 {strides = array<i32>} : memref<256x64xf32, #tpu.memory_space<vmem>>, vector<256x64xf32>,
    %c0_i32_8 = arith.constant 0 : i32
    %9 = arith.cmpi eq, %arg2, %c0_i32_8 : i32
    %10 = arith.extui %9 : i1 to i32
    %c0_i32_9 = arith.constant 0 : i32
    %11 = arith.cmpi ne, %10, %c0_i32_9 : i32
    scf.if %11 {
      %c0_10 = arith.constant 0 : index
      %c0_11 = arith.constant 0 : index
      %12 = vector.load %arg7[%c0_10, %c0_11] : memref<256x64xf32, #tpu.memory_space<vmem>>, vector<256x64xf32>
      %c0_12 = arith.constant 0 : index
      %c0_13 = arith.constant 0 : index
      %13 = vector.load %arg5[%c0_12, %c0_13] : memref<1x64xf32, #tpu.memory_space<vmem>>, vector<1x64xf32>
      %14 = vector.broadcast %13 : vector<1x64xf32> to vector<256x64xf32>
      %15 = arith.addf %12, %14 : vector<256x64xf32>
      %c0_14 = arith.constant 0 : index
      %c0_15 = arith.constant 0 : index
      %16 = vector.load %arg6[%c0_14, %c0_15] : memref<256x64xf32, #tpu.memory_space<vmem>>, vector<256x64xf32>
      tpu.vector_store %arg6[%c0_14, %c0_15], %15 {strides = array<i32>} : memref<256x64xf32, #tpu.memory_space<vmem>>, vector<256x64xf32>,
    } else {
    }
    return
  }
  func.func @transform_0(%arg0: i32, %arg1: i32, %arg2: i32) -> (i32, i32) {
    %c0_i32 = arith.constant 0 : i32
    return %arg0, %arg2 : i32, i32
  }
  func.func @transform_1(%arg0: i32, %arg1: i32, %arg2: i32) -> (i32, i32) {
    %c0_i32 = arith.constant 0 : i32
    return %arg2, %arg1 : i32, i32
  }
  func.func @transform_2(%arg0: i32, %arg1: i32, %arg2: i32) -> (i32, i32) {
    %c0_i32 = arith.constant 0 : i32
    %c0_i32_0 = arith.constant 0 : i32
    return %c0_i32, %arg1 : i32, i32
  }
  func.func @transform_3(%arg0: i32, %arg1: i32, %arg2: i32) -> (i32, i32) {
    %c0_i32 = arith.constant 0 : i32
    return %arg0, %arg1 : i32, i32
  }
}

</mosaic_0001>

<bundles_post_ra>
// kernel: tpu_custom_call.1
= control target key start
LH: loop header
LB: loop body
LE: loop exit
PB: predicated region body
PF: predicated region fallthrough
CT: control target
= control target key end

     0   :  { %8 = vsyncpa [#allocation4], 0  ;;  %s1442_s0 = inlined_call_operand.vmem [shape: bf16[4096,27], index: 0, kind: input, shape index: {}]   ;;  %s1443_s1 = inlined_call_operand.hbm [shape: bf16[27,64], index: 1, kind: input, shape index: {}]   ;;  %s1444_s2 = inlined_call_operand.hbm [shape: f32[1,64], index: 2, kind: input, shape index: {}]   ;;  %s1445_s3 = inlined_call_operand.vmem [shape: f32[4096,64], index: 3, kind: output, shape index: {}]  }
   0x1   :  { %9 = vsyncpa [#allocation6], 0  ;;  %s1175_s12 = smov 0   ;;  %s1177_s13 = smov 0  }
   0x2   :  { %s1179_s14 = smov 0  }
   0x3 LB: > { %s880_s15 = sadd.s32 4294967295, %s1147_s14   ;;  %s34_s16 = sadd.s32 1, %s1143_s13  ;;  %s1147_s14 = sphi %s1179_s14, %s15_s14   ;;  %s1143_s13 = sphi %s1177_s13, %s1449_s13   ;;  %s1139_s12 = sphi %s1175_s12, %s1448_s12  }
   0x4   : > { %p36_p0 = scmp.ge.s32.totalorder %s34_s16, 16  ;;  %p882_p1 = scmp.ge.s32.totalorder %s1147_s14, 1 }
   0x5   : > { %p149_p2 = scmp.lt.s32.totalorder %s1147_s14, 17  ;;  %p1200_p4 = scmp.eq.s32.totalorder %s880_s15, 0 }
   0x6   : > { %s1451_s16 = smov (%p36_p0, %s34_s16), 0  ;;  %s164_s21 = sshll.u32 %s1443_s1, 4  ;;  %s165_s21 = int_to_ptr.hbm [resolvable:$true] %s164_s21 }
   0x7   : > { %p1196_p3 = pnand %p882_p1, %p149_p2  ;;  %s1149_s22 = smov [#allocation3]  }
   0x8   : > { %s166_s23 = sshll.u32 %s1149_s22, 4  ;;  %s180_s26 = sshll.u32 %s1444_s2, 4  ;;  %s167_s23 = int_to_ptr.vmem [resolvable:$true] %s166_s23  ;;  %s181_s26 = int_to_ptr.hbm [resolvable:$true] %s180_s26 }
   0x9   : > { %p1015_p5 = pneg %p1196_p3  ;;  %s1150_s27 = smov 64  }
   0xa   : > { %s1151_s28 = smov 4   ;;  %s1152_s29 = smov [#allocation5]  }
   0xb   : > { %p1016_p6 = pnand %p1200_p4, %p1015_p5  ;;  %s182_s30 = sshll.u32 %s1152_s29, 4  ;;  %s183_s30 = int_to_ptr.vmem [resolvable:$true] %s182_s30 }
   0xc   : > { %207 = sbr.rel (%p1196_p3) target bundleno = 236 (0xec), region = 32 }
   0xd   : > { %1018 = dma.hbm_to_vmem [thread:$0]  (!%p1016_p6), %s165_s21, 256, %s167_s23, [#allocation4], %s1150_s27, %s1150_s27, %s1151_s28  }
   0xe   : > { %1021 = dma.hbm_to_vmem [thread:$0]  (!%p1016_p6), %s181_s26, 16, %s183_s30, [#allocation6]  }
  0x11   : > { %1130 = dma.done.wait (%p1200_p4), [#allocation4], 256  }
  0x12   : > { %1132 = vsyncadd (%p1200_p4), [#allocation4], 4294967040 }
  0x13   : > { %1134 = dma.done.wait (%p1200_p4), [#allocation6], 16  }
  0x14   : > { %1136 = vsyncadd (%p1200_p4), [#allocation6], 4294967280  ;;  %s889_s4 = sshll.u32 %s1139_s12, 5  ;;  %vm508_vm0 = vcmask 1044480   ;;  %vm509_vm1 = vcmask 1045504   ;;  %v1153_v0 = vmov 65535  }
  0x15   : > { %p244_p7 = scmp.lt.s32.totalorder %s889_s4, 511  ;;  %v510_v1 = vsel %vm508_vm0, 4294967295, %v1153_v0  ;;  %v963_v2 = vld [vmem:[#allocation3 + $0x8] sm:$0xf]  ;;  %v1000_v3 = vld [vmem:[#allocation3 + $0x8] sm:$0x30] }
  0x16   : > { %v511_v4 = vsel %vm509_vm1, %v510_v1, 0  ;;  %v964_v5 = vor.u32 %v1000_v3, %v963_v2  ;;  %v999_v7 = vld [vmem:[#allocation3] sm:$0xff]  ;;  %vm459_vm2 = vcmask 220160   ;;  %vm267_vm3 = vcmask 523264   ;;  %v1300_v34 = vld [vmem:[#allocation5] ss:$0 sm:$0xff] }
  0x17   : > { %s1453_s4 = smov (!%p244_p7, %s889_s4), 511  ;;  %v1154_v16 = vmov 0.0  }
  0x18   : > { %s890_s5 = sshll.u32 %s1453_s4, 2  ;;  %v513_v6 = vand.u32 %v964_v5, %v511_v4  ;;  %268 = vst.msk [vmem:[#allocation2] sm:$0xff] %vm267_vm3, %v1154_v16  ;;  %s892_s9 = sshll.u32 %s1453_s4, 3 }
  0x19   : > { %s1231_s8 = scalar_lea.vmem %s1442_s0, %s890_s5  ;;  %269 = vst.msk [vmem:[#allocation2 + $0x8] sm:$0xff] %vm267_vm3, %v1154_v16  ;;  %s1305_s12 = scalar_lea.vmem %s1445_s3, %s892_s9 }
  0x1a   : > { %521 = vmatpush.bf16.msra.mxu0 %v513_v6  ;;  %1001 = vmatpush.bf16.msra.mxu1 %v513_v6  ;;  %v983_v8 = vld [vmem:[%s1231_s8] sm:$0xff]  ;;  %v984_v12 = vld [vmem:[%s1231_s8 + $0x8] sm:$0xff]  ;;  %270 = vst.msk [vmem:[#allocation2 + $0x10] sm:$0xff] %vm267_vm3, %v1154_v16  ;;  %v985_v17 = vld [vmem:[%s1231_s8 + $0x10] sm:$0xff] }
  0x1b   : > { %1002 = vmatpush.bf16.msra.mxu2 %v513_v6  ;;  %1003 = vmatpush.bf16.msra.mxu3 %v513_v6  ;;  %v987_v9 = vld [vmem:[%s1231_s8 + $0x20] sm:$0xff]  ;;  %v988_v13 = vld [vmem:[%s1231_s8 + $0x28] sm:$0xff]  ;;  %271 = vst.msk [vmem:[#allocation2 + $0x18] sm:$0xff] %vm267_vm3, %v1154_v16  ;;  %v989_v18 = vld [vmem:[%s1231_s8 + $0x30] sm:$0xff] }
  0x1c   : > { %v991_v10 = vld [vmem:[%s1231_s8 + $0x40] sm:$0xff]  ;;  %v992_v14 = vld [vmem:[%s1231_s8 + $0x48] sm:$0xff]  ;;  %272 = vst.msk [vmem:[#allocation2 + $0x20] sm:$0xff] %vm267_vm3, %v1154_v16  ;;  %v993_v19 = vld [vmem:[%s1231_s8 + $0x50] sm:$0xff] }
  0x1d   : > { %v995_v11 = vld [vmem:[%s1231_s8 + $0x60] sm:$0xff]  ;;  %v996_v15 = vld [vmem:[%s1231_s8 + $0x68] sm:$0xff]  ;;  %273 = vst.msk [vmem:[#allocation2 + $0x28] sm:$0xff] %vm267_vm3, %v1154_v16  ;;  %v997_v20 = vld [vmem:[%s1231_s8 + $0x70] sm:$0xff] }
  0x1e   : > { %522 = vmatpush.bf16.msra.mxu0 %v999_v7  ;;  %1004 = vmatpush.bf16.msra.mxu1 %v999_v7  ;;  %274 = vst.msk [vmem:[#allocation2 + $0x30] sm:$0xff] %vm267_vm3, %v1154_v16  ;;  %v986_v21 = vld [vmem:[%s1231_s8 + $0x18] sm:$0xff] }
  0x1f   : > { %1005 = vmatpush.bf16.msra.mxu2 %v999_v7  ;;  %1006 = vmatpush.bf16.msra.mxu3 %v999_v7  ;;  %275 = vst.msk [vmem:[#allocation2 + $0x38] sm:$0xff] %vm267_vm3, %v1154_v16  ;;  %v990_v22 = vld [vmem:[%s1231_s8 + $0x38] sm:$0xff]  ;;  %v300_v25 = vld [vmem:[#allocation2] sm:$0xff] }
  0x20   : > { %276 = vst.msk [vmem:[#allocation2 + $0x40] sm:$0xff] %vm267_vm3, %v1154_v16  ;;  %v994_v23 = vld [vmem:[%s1231_s8 + $0x58] sm:$0xff]  ;;  %v301_v33 = vld [vmem:[#allocation2 + $0x8] sm:$0xff] }
  0x21   : > { %965 = vmatmul.msk.bf16.vlgmr.msra.gmra.mxu0 %vm459_vm2, %v983_v8  ;;  %969 = vmatmul.msk.bf16.vlgmr.msra.gmra.mxu1 %vm459_vm2, %v987_v9  ;;  %277 = vst.msk [vmem:[#allocation2 + $0x48] sm:$0xff] %vm267_vm3, %v1154_v16  ;;  %v998_v24 = vld [vmem:[%s1231_s8 + $0x78] sm:$0xff]  ;;  %v302_v54 = vld [vmem:[#allocation2 + $0x10] sm:$0xff] }
  0x22   : > { %973 = vmatmul.msk.bf16.vlgmr.msra.gmra.mxu2 %vm459_vm2, %v991_v10  ;;  %977 = vmatmul.msk.bf16.vlgmr.msra.gmra.mxu3 %vm459_vm2, %v995_v11  ;;  %278 = vst.msk [vmem:[#allocation2 + $0x50] sm:$0xff] %vm267_vm3, %v1154_v16  ;;  %v303_v8 = vld [vmem:[#allocation2 + $0x18] sm:$0xff] }
  0x23   : > { %279 = vst.msk [vmem:[#allocation2 + $0x58] sm:$0xff] %vm267_vm3, %v1154_v16 }
  0x24   : > { %280 = vst.msk [vmem:[#allocation2 + $0x60] sm:$0xff] %vm267_vm3, %v1154_v16 }
  0x25   : > { %281 = vst.msk [vmem:[#allocation2 + $0x68] sm:$0xff] %vm267_vm3, %v1154_v16 }
  0x26   : > { %282 = vst.msk [vmem:[#allocation2 + $0x70] sm:$0xff] %vm267_vm3, %v1154_v16 }
  0x27   : > { %283 = vst.msk [vmem:[#allocation2 + $0x78] sm:$0xff] %vm267_vm3, %v1154_v16  ;;  %v308_v26 = vld [vmem:[#allocation2 + $0x40] sm:$0xff] }
  0x28   : > { %284 = vst.msk [vmem:[#allocation2 + $0x80] sm:$0xff] %vm267_vm3, %v1154_v16  ;;  %v309_v40 = vld [vmem:[#allocation2 + $0x48] sm:$0xff] }
  0x29   : > { %285 = vst.msk [vmem:[#allocation2 + $0x88] sm:$0xff] %vm267_vm3, %v1154_v16  ;;  %v310_v58 = vld [vmem:[#allocation2 + $0x50] sm:$0xff] }
  0x2a   : > { %286 = vst.msk [vmem:[#allocation2 + $0x90] sm:$0xff] %vm267_vm3, %v1154_v16 }
  0x2b   : > { %287 = vst.msk [vmem:[#allocation2 + $0x98] sm:$0xff] %vm267_vm3, %v1154_v16 }
  0x2c   : > { %288 = vst.msk [vmem:[#allocation2 + $0xa0] sm:$0xff] %vm267_vm3, %v1154_v16 }
  0x2d   : > { %289 = vst.msk [vmem:[#allocation2 + $0xa8] sm:$0xff] %vm267_vm3, %v1154_v16 }
  0x2e   : > { %290 = vst.msk [vmem:[#allocation2 + $0xb0] sm:$0xff] %vm267_vm3, %v1154_v16 }
  0x2f   : > { %291 = vst.msk [vmem:[#allocation2 + $0xb8] sm:$0xff] %vm267_vm3, %v1154_v16  ;;  %v316_v31 = vld [vmem:[#allocation2 + $0x80] sm:$0xff] }
  0x30   : > { %292 = vst.msk [vmem:[#allocation2 + $0xc0] sm:$0xff] %vm267_vm3, %v1154_v16  ;;  %v317_v48 = vld [vmem:[#allocation2 + $0x88] sm:$0xff] }
  0x31   : > { %966 = vmatmul.msk.bf16.gmra.mxu0 %vm459_vm2, %v984_v12  ;;  %970 = vmatmul.msk.bf16.gmra.mxu1 %vm459_vm2, %v988_v13  ;;  %293 = vst.msk [vmem:[#allocation2 + $0xc8] sm:$0xff] %vm267_vm3, %v1154_v16  ;;  %v318_v2 = vld [vmem:[#allocation2 + $0x90] sm:$0xff]  ;;  %v311_v12 = vld [vmem:[#allocation2 + $0x58] sm:$0xff] }
  0x32   : > { %974 = vmatmul.msk.bf16.gmra.mxu2 %vm459_vm2, %v992_v14  ;;  %978 = vmatmul.msk.bf16.gmra.mxu3 %vm459_vm2, %v996_v15  ;;  %294 = vst.msk [vmem:[#allocation2 + $0xd0] sm:$0xff] %vm267_vm3, %v1154_v16 }
  0x33   : > { %295 = vst.msk [vmem:[#allocation2 + $0xd8] sm:$0xff] %vm267_vm3, %v1154_v16 }
  0x34   : > { %296 = vst.msk [vmem:[#allocation2 + $0xe0] sm:$0xff] %vm267_vm3, %v1154_v16 }
  0x35   : > { %297 = vst.msk [vmem:[#allocation2 + $0xe8] sm:$0xff] %vm267_vm3, %v1154_v16 }
  0x36   : > { %298 = vst.msk [vmem:[#allocation2 + $0xf0] sm:$0xff] %vm267_vm3, %v1154_v16 }
  0x37   : > { %299 = vst.msk [vmem:[#allocation2 + $0xf8] sm:$0xff] %vm267_vm3, %v1154_v16  ;;  %v324_v32 = vld [vmem:[#allocation2 + $0xc0] sm:$0xff] }
  0x38   : > { %v325_v49 = vld [vmem:[#allocation2 + $0xc8] sm:$0xff] }
  0x39   : > { %v326_v3 = vld [vmem:[#allocation2 + $0xd0] sm:$0xff] }
  0x41   : > { %967 = vmatmul.msk.bf16.gmra.mxu0 %vm459_vm2, %v985_v17  ;;  %971 = vmatmul.msk.bf16.gmra.mxu1 %vm459_vm2, %v989_v18 }
  0x42   : > { %975 = vmatmul.msk.bf16.gmra.mxu2 %vm459_vm2, %v993_v19  ;;  %979 = vmatmul.msk.bf16.gmra.mxu3 %vm459_vm2, %v997_v20  ;;  %v319_v20 = vld [vmem:[#allocation2 + $0x98] sm:$0xff] }
  0x51   : > { %968 = vmatmul.msk.bf16.gmra.mxu0 %vm459_vm2, %v986_v21  ;;  %972 = vmatmul.msk.bf16.gmra.mxu1 %vm459_vm2, %v990_v22 }
  0x52   : > { %976 = vmatmul.msk.bf16.gmra.mxu2 %vm459_vm2, %v994_v23  ;;  %980 = vmatmul.msk.bf16.gmra.mxu3 %vm459_vm2, %v998_v24 }
  0x9e   : > { %v524_v27 = vpop.f32.mrf.mxu0  ;;  %v544_v28 = vpop.f32.mrf.mxu1 }
  0x9f   : > { %v604_v29 = vadd.f32 %v524_v27, %v300_v25  ;;  %v612_v30 = vadd.f32 %v544_v28, %v308_v26  ;;  %v327_v25 = vld [vmem:[#allocation2 + $0xd8] sm:$0xff] }
  0xa1   : > { %637 = vst.msk [vmem:[#allocation2] sm:$0xff] %vm267_vm3, %v604_v29  ;;  %v304_v29 = vld [vmem:[#allocation2 + $0x20] sm:$0xff] }
  0xa2   : > { %645 = vst.msk [vmem:[#allocation2 + $0x40] sm:$0xff] %vm267_vm3, %v612_v30 }
  0xa5   : > { %v564_v35 = vpop.f32.mrf.mxu2  ;;  %v584_v36 = vpop.f32.mrf.mxu3 }
  0xa6   : > { %v620_v37 = vadd.f32 %v564_v35, %v316_v31  ;;  %v628_v38 = vadd.f32 %v584_v36, %v324_v32  ;;  %v526_v39 = vpop.f32.mrf.mxu0  ;;  %v546_v41 = vpop.f32.mrf.mxu1 }
  0xa7   : > { %v605_v42 = vadd.f32 %v526_v39, %v301_v33  ;;  %v613_v46 = vadd.f32 %v546_v41, %v309_v40  ;;  %v312_v39 = vld [vmem:[#allocation2 + $0x60] sm:$0xff] }
  0xa8   : > { %v672_v43 = vld [vmem:[#allocation2] sm:$0xff]  ;;  %653 = vst.msk [vmem:[#allocation2 + $0x80] sm:$0xff] %vm267_vm3, %v620_v37 }
  0xa9   : > { %v708_v44 = vadd.f32 %v1300_v34, %v672_v43  ;;  %v680_v45 = vld [vmem:[#allocation2 + $0x40] sm:$0xff]  ;;  %661 = vst.msk [vmem:[#allocation2 + $0xc0] sm:$0xff] %vm267_vm3, %v628_v38 }
  0xaa   : > { %v716_v47 = vadd.f32 %v1300_v34, %v680_v45  ;;  %638 = vst.msk [vmem:[#allocation2 + $0x8] sm:$0xff] %vm267_vm3, %v605_v42  ;;  %v320_v41 = vld [vmem:[#allocation2 + $0xa0] sm:$0xff] }
  0xab   : > { %740 = vst.msk [vmem:[%s1305_s12] sm:$0xff] %vm267_vm3, %v708_v44  ;;  %v328_v42 = vld [vmem:[#allocation2 + $0xe0] sm:$0xff] }
  0xac   : > { %748 = vst.msk [vmem:[%s1305_s12 + $0x40] sm:$0xff] %vm267_vm3, %v716_v47 }
  0xad   : > { %646 = vst.msk [vmem:[#allocation2 + $0x48] sm:$0xff] %vm267_vm3, %v613_v46  ;;  %v566_v50 = vpop.f32.mrf.mxu2  ;;  %v586_v51 = vpop.f32.mrf.mxu3 }
  0xae   : > { %v621_v52 = vadd.f32 %v566_v50, %v317_v48  ;;  %v629_v53 = vadd.f32 %v586_v51, %v325_v49  ;;  %v529_v55 = vpop.f32.mrf.mxu0  ;;  %v549_v56 = vpop.f32.mrf.mxu1  ;;  %v305_v49 = vld [vmem:[#allocation2 + $0x28] sm:$0xff] }
  0xaf   : > { %v688_v57 = vld [vmem:[#allocation2 + $0x80] sm:$0xff]  ;;  %v606_v63 = vadd.f32 %v529_v55, %v302_v54  ;;  %v614_v1 = vadd.f32 %v549_v56, %v310_v58 }
  0xb0   : > { %v724_v59 = vadd.f32 %v1300_v34, %v688_v57  ;;  %v696_v60 = vld [vmem:[#allocation2 + $0xc0] sm:$0xff]  ;;  %654 = vst.msk [vmem:[#allocation2 + $0x88] sm:$0xff] %vm267_vm3, %v621_v52 }
  0xb1   : > { %v732_v61 = vadd.f32 %v1300_v34, %v696_v60  ;;  %v673_v62 = vld [vmem:[#allocation2 + $0x8] sm:$0xff]  ;;  %662 = vst.msk [vmem:[#allocation2 + $0xc8] sm:$0xff] %vm267_vm3, %v629_v53 }
  0xb2   : > { %756 = vst.msk [vmem:[%s1305_s12 + $0x80] sm:$0xff] %vm267_vm3, %v724_v59  ;;  %v709_v0 = vadd.f32 %v1300_v34, %v673_v62  ;;  %v313_v53 = vld [vmem:[#allocation2 + $0x68] sm:$0xff] }
  0xb3   : > { %764 = vst.msk [vmem:[%s1305_s12 + $0xc0] sm:$0xff] %vm267_vm3, %v732_v61  ;;  %v321_v60 = vld [vmem:[#allocation2 + $0xa8] sm:$0xff] }
  0xb4   : > { %741 = vst.msk [vmem:[%s1305_s12 + $0x8] sm:$0xff] %vm267_vm3, %v709_v0  ;;  %v681_v4 = vld [vmem:[#allocation2 + $0x48] sm:$0xff] }
  0xb5   : > { %v717_v5 = vadd.f32 %v1300_v34, %v681_v4  ;;  %639 = vst.msk [vmem:[#allocation2 + $0x10] sm:$0xff] %vm267_vm3, %v606_v63  ;;  %v569_v6 = vpop.f32.mrf.mxu2  ;;  %v589_v7 = vpop.f32.mrf.mxu3  ;;  %v329_v61 = vld [vmem:[#allocation2 + $0xe8] sm:$0xff] }
  0xb6   : > { %647 = vst.msk [vmem:[#allocation2 + $0x50] sm:$0xff] %vm267_vm3, %v614_v1  ;;  %v622_v9 = vadd.f32 %v569_v6, %v318_v2  ;;  %v630_v10 = vadd.f32 %v589_v7, %v326_v3  ;;  %v531_v11 = vpop.f32.mrf.mxu0  ;;  %v551_v13 = vpop.f32.mrf.mxu1 }
  0xb7   : > { %749 = vst.msk [vmem:[%s1305_s12 + $0x48] sm:$0xff] %vm267_vm3, %v717_v5  ;;  %v689_v14 = vld [vmem:[#allocation2 + $0x88] sm:$0xff]  ;;  %v607_v17 = vadd.f32 %v531_v11, %v303_v8  ;;  %v615_v19 = vadd.f32 %v551_v13, %v311_v12  ;;  %v306_v5 = vld [vmem:[#allocation2 + $0x30] sm:$0xff] }
  0xb8   : > { %v725_v15 = vadd.f32 %v1300_v34, %v689_v14  ;;  %v697_v16 = vld [vmem:[#allocation2 + $0xc8] sm:$0xff]  ;;  %655 = vst.msk [vmem:[#allocation2 + $0x90] sm:$0xff] %vm267_vm3, %v622_v9  ;;  %v314_v14 = vld [vmem:[#allocation2 + $0x70] sm:$0xff] }
  0xb9   : > { %v733_v18 = vadd.f32 %v1300_v34, %v697_v16  ;;  %663 = vst.msk [vmem:[#allocation2 + $0xd0] sm:$0xff] %vm267_vm3, %v630_v10 }
  0xba   : > { %757 = vst.msk [vmem:[%s1305_s12 + $0x88] sm:$0xff] %vm267_vm3, %v725_v15 }
  0xbb   : > { %765 = vst.msk [vmem:[%s1305_s12 + $0xc8] sm:$0xff] %vm267_vm3, %v733_v18 }
  0xbc   : > { %v674_v21 = vld [vmem:[#allocation2 + $0x10] sm:$0xff]  ;;  %640 = vst.msk [vmem:[#allocation2 + $0x18] sm:$0xff] %vm267_vm3, %v607_v17 }
  0xbd   : > { %v710_v22 = vadd.f32 %v1300_v34, %v674_v21  ;;  %v682_v23 = vld [vmem:[#allocation2 + $0x50] sm:$0xff]  ;;  %648 = vst.msk [vmem:[#allocation2 + $0x58] sm:$0xff] %vm267_vm3, %v615_v19  ;;  %v571_v24 = vpop.f32.mrf.mxu2  ;;  %v591_v26 = vpop.f32.mrf.mxu3 }
  0xbe   : > { %v718_v27 = vadd.f32 %v1300_v34, %v682_v23  ;;  %v623_v28 = vadd.f32 %v571_v24, %v319_v20  ;;  %v534_v30 = vpop.f32.mrf.mxu0  ;;  %v554_v31 = vpop.f32.mrf.mxu1  ;;  %v631_v36 = vadd.f32 %v591_v26, %v327_v25  ;;  %v322_v17 = vld [vmem:[#allocation2 + $0xb0] sm:$0xff]  ;;  %v307_v26 = vld [vmem:[#allocation2 + $0x38] sm:$0xff] }
  0xbf   : > { %742 = vst.msk [vmem:[%s1305_s12 + $0x10] sm:$0xff] %vm267_vm3, %v710_v22  ;;  %v690_v32 = vld [vmem:[#allocation2 + $0x90] sm:$0xff]  ;;  %v608_v38 = vadd.f32 %v534_v30, %v304_v29  ;;  %v616_v45 = vadd.f32 %v554_v31, %v312_v39  ;;  %v315_v29 = vld [vmem:[#allocation2 + $0x78] sm:$0xff] }
  0xc0   : > { %750 = vst.msk [vmem:[%s1305_s12 + $0x50] sm:$0xff] %vm267_vm3, %v718_v27  ;;  %v726_v33 = vadd.f32 %v1300_v34, %v690_v32  ;;  %v698_v35 = vld [vmem:[#allocation2 + $0xd0] sm:$0xff]  ;;  %v331_v39 = vld [vmem:[#allocation2 + $0xf8] sm:$0xff] }
  0xc1   : > { %v734_v37 = vadd.f32 %v1300_v34, %v698_v35  ;;  %656 = vst.msk [vmem:[#allocation2 + $0x98] sm:$0xff] %vm267_vm3, %v623_v28  ;;  %v330_v23 = vld [vmem:[#allocation2 + $0xf0] sm:$0xff] }
  0xc2   : > { %758 = vst.msk [vmem:[%s1305_s12 + $0x90] sm:$0xff] %vm267_vm3, %v726_v33 }
  0xc3   : > { %766 = vst.msk [vmem:[%s1305_s12 + $0xd0] sm:$0xff] %vm267_vm3, %v734_v37  ;;  %v675_v40 = vld [vmem:[#allocation2 + $0x18] sm:$0xff] }
  0xc4   : > { %v711_v43 = vadd.f32 %v1300_v34, %v675_v40  ;;  %v683_v44 = vld [vmem:[#allocation2 + $0x58] sm:$0xff]  ;;  %664 = vst.msk [vmem:[#allocation2 + $0xd8] sm:$0xff] %vm267_vm3, %v631_v36 }
  0xc5   : > { %v719_v46 = vadd.f32 %v1300_v34, %v683_v44  ;;  %641 = vst.msk [vmem:[#allocation2 + $0x20] sm:$0xff] %vm267_vm3, %v608_v38  ;;  %v574_v47 = vpop.f32.mrf.mxu2  ;;  %v594_v48 = vpop.f32.mrf.mxu3  ;;  %v323_v38 = vld [vmem:[#allocation2 + $0xb8] sm:$0xff] }
  0xc6   : > { %743 = vst.msk [vmem:[%s1305_s12 + $0x18] sm:$0xff] %vm267_vm3, %v711_v43  ;;  %v624_v50 = vadd.f32 %v574_v47, %v320_v41  ;;  %v632_v51 = vadd.f32 %v594_v48, %v328_v42  ;;  %v536_v52 = vpop.f32.mrf.mxu0  ;;  %v556_v54 = vpop.f32.mrf.mxu1 }
  0xc7   : > { %751 = vst.msk [vmem:[%s1305_s12 + $0x58] sm:$0xff] %vm267_vm3, %v719_v46  ;;  %v609_v56 = vadd.f32 %v536_v52, %v305_v49  ;;  %v617_v58 = vadd.f32 %v556_v54, %v313_v53 }
  0xc8   : > { %v691_v55 = vld [vmem:[#allocation2 + $0x98] sm:$0xff]  ;;  %649 = vst.msk [vmem:[#allocation2 + $0x60] sm:$0xff] %vm267_vm3, %v616_v45 }
  0xc9   : > { %v727_v57 = vadd.f32 %v1300_v34, %v691_v55  ;;  %657 = vst.msk [vmem:[#allocation2 + $0xa0] sm:$0xff] %vm267_vm3, %v624_v50 }
  0xca   : > { %665 = vst.msk [vmem:[#allocation2 + $0xe0] sm:$0xff] %vm267_vm3, %v632_v51 }
  0xcb   : > { %759 = vst.msk [vmem:[%s1305_s12 + $0x98] sm:$0xff] %vm267_vm3, %v727_v57  ;;  %v699_v59 = vld [vmem:[#allocation2 + $0xd8] sm:$0xff] }
  0xcc   : > { %v735_v62 = vadd.f32 %v1300_v34, %v699_v59  ;;  %v676_v63 = vld [vmem:[#allocation2 + $0x20] sm:$0xff]  ;;  %642 = vst.msk [vmem:[#allocation2 + $0x28] sm:$0xff] %vm267_vm3, %v609_v56 }
  0xcd   : > { %v712_v0 = vadd.f32 %v1300_v34, %v676_v63  ;;  %650 = vst.msk [vmem:[#allocation2 + $0x68] sm:$0xff] %vm267_vm3, %v617_v58  ;;  %v576_v1 = vpop.f32.mrf.mxu2  ;;  %v596_v2 = vpop.f32.mrf.mxu3 }
  0xce   : > { %767 = vst.msk [vmem:[%s1305_s12 + $0xd8] sm:$0xff] %vm267_vm3, %v735_v62  ;;  %v625_v3 = vadd.f32 %v576_v1, %v321_v60  ;;  %v633_v4 = vadd.f32 %v596_v2, %v329_v61  ;;  %v539_v6 = vpop.f32.mrf.mxu0  ;;  %v559_v7 = vpop.f32.mrf.mxu1 }
  0xcf   : > { %744 = vst.msk [vmem:[%s1305_s12 + $0x20] sm:$0xff] %vm267_vm3, %v712_v0  ;;  %v684_v8 = vld [vmem:[#allocation2 + $0x60] sm:$0xff]  ;;  %v610_v13 = vadd.f32 %v539_v6, %v306_v5  ;;  %v618_v20 = vadd.f32 %v559_v7, %v314_v14 }
  0xd0   : > { %v720_v9 = vadd.f32 %v1300_v34, %v684_v8  ;;  %v692_v10 = vld [vmem:[#allocation2 + $0xa0] sm:$0xff]  ;;  %658 = vst.msk [vmem:[#allocation2 + $0xa8] sm:$0xff] %vm267_vm3, %v625_v3 }
  0xd1   : > { %v728_v11 = vadd.f32 %v1300_v34, %v692_v10  ;;  %v700_v12 = vld [vmem:[#allocation2 + $0xe0] sm:$0xff]  ;;  %666 = vst.msk [vmem:[#allocation2 + $0xe8] sm:$0xff] %vm267_vm3, %v633_v4 }
  0xd2   : > { %752 = vst.msk [vmem:[%s1305_s12 + $0x60] sm:$0xff] %vm267_vm3, %v720_v9  ;;  %v736_v15 = vadd.f32 %v1300_v34, %v700_v12 }
  0xd3   : > { %760 = vst.msk [vmem:[%s1305_s12 + $0xa0] sm:$0xff] %vm267_vm3, %v728_v11  ;;  %v677_v16 = vld [vmem:[#allocation2 + $0x28] sm:$0xff] }
  0xd4   : > { %768 = vst.msk [vmem:[%s1305_s12 + $0xe0] sm:$0xff] %vm267_vm3, %v736_v15  ;;  %v713_v18 = vadd.f32 %v1300_v34, %v677_v16  ;;  %v685_v19 = vld [vmem:[#allocation2 + $0x68] sm:$0xff] }
  0xd5   : > { %v721_v21 = vadd.f32 %v1300_v34, %v685_v19  ;;  %643 = vst.msk [vmem:[#allocation2 + $0x30] sm:$0xff] %vm267_vm3, %v610_v13  ;;  %v579_v22 = vpop.f32.mrf.mxu2  ;;  %v599_v24 = vpop.f32.mrf.mxu3 }
  0xd6   : > { %745 = vst.msk [vmem:[%s1305_s12 + $0x28] sm:$0xff] %vm267_vm3, %v713_v18  ;;  %v626_v25 = vadd.f32 %v579_v22, %v322_v17  ;;  %v541_v27 = vpop.f32.mrf.mxu0  ;;  %v561_v30 = vpop.f32.mrf.mxu1  ;;  %v634_v33 = vadd.f32 %v599_v24, %v330_v23 }
  0xd7   : > { %753 = vst.msk [vmem:[%s1305_s12 + $0x68] sm:$0xff] %vm267_vm3, %v721_v21  ;;  %v693_v28 = vld [vmem:[#allocation2 + $0xa8] sm:$0xff]  ;;  %v611_v36 = vadd.f32 %v541_v27, %v307_v26  ;;  %v619_v37 = vadd.f32 %v561_v30, %v315_v29 }
  0xd8   : > { %v729_v31 = vadd.f32 %v1300_v34, %v693_v28  ;;  %v701_v32 = vld [vmem:[#allocation2 + $0xe8] sm:$0xff]  ;;  %651 = vst.msk [vmem:[#allocation2 + $0x70] sm:$0xff] %vm267_vm3, %v618_v20 }
  0xd9   : > { %v737_v35 = vadd.f32 %v1300_v34, %v701_v32  ;;  %659 = vst.msk [vmem:[#allocation2 + $0xb0] sm:$0xff] %vm267_vm3, %v626_v25 }
  0xda   : > { %761 = vst.msk [vmem:[%s1305_s12 + $0xa8] sm:$0xff] %vm267_vm3, %v729_v31 }
  0xdb   : > { %769 = vst.msk [vmem:[%s1305_s12 + $0xe8] sm:$0xff] %vm267_vm3, %v737_v35 }
  0xdc   : > { %v678_v40 = vld [vmem:[#allocation2 + $0x30] sm:$0xff]  ;;  %667 = vst.msk [vmem:[#allocation2 + $0xf0] sm:$0xff] %vm267_vm3, %v634_v33 }
  0xdd   : > { %v714_v41 = vadd.f32 %v1300_v34, %v678_v40  ;;  %644 = vst.msk [vmem:[#allocation2 + $0x38] sm:$0xff] %vm267_vm3, %v611_v36  ;;  %v581_v42 = vpop.f32.mrf.mxu2  ;;  %v601_v43 = vpop.f32.mrf.mxu3 }
  0xde   : > { %652 = vst.msk [vmem:[#allocation2 + $0x78] sm:$0xff] %vm267_vm3, %v619_v37  ;;  %v627_v44 = vadd.f32 %v581_v42, %v323_v38  ;;  %v635_v45 = vadd.f32 %v601_v43, %v331_v39 }
  0xdf   : > { %746 = vst.msk [vmem:[%s1305_s12 + $0x30] sm:$0xff] %vm267_vm3, %v714_v41  ;;  %v686_v46 = vld [vmem:[#allocation2 + $0x70] sm:$0xff] }
  0xe0   : > { %v722_v47 = vadd.f32 %v1300_v34, %v686_v46  ;;  %v694_v48 = vld [vmem:[#allocation2 + $0xb0] sm:$0xff]  ;;  %660 = vst.msk [vmem:[#allocation2 + $0xb8] sm:$0xff] %vm267_vm3, %v627_v44 }
  0xe1   : > { %v730_v49 = vadd.f32 %v1300_v34, %v694_v48  ;;  %668 = vst.msk [vmem:[#allocation2 + $0xf8] sm:$0xff] %vm267_vm3, %v635_v45 }
  0xe2   : > { %754 = vst.msk [vmem:[%s1305_s12 + $0x70] sm:$0xff] %vm267_vm3, %v722_v47 }
  0xe3   : > { %762 = vst.msk [vmem:[%s1305_s12 + $0xb0] sm:$0xff] %vm267_vm3, %v730_v49  ;;  %v702_v50 = vld [vmem:[#allocation2 + $0xf0] sm:$0xff] }
  0xe4   : > { %v738_v51 = vadd.f32 %v1300_v34, %v702_v50  ;;  %v679_v52 = vld [vmem:[#allocation2 + $0x38] sm:$0xff] }
  0xe5   : > { %v715_v53 = vadd.f32 %v1300_v34, %v679_v52  ;;  %v687_v54 = vld [vmem:[#allocation2 + $0x78] sm:$0xff] }
  0xe6   : > { %770 = vst.msk [vmem:[%s1305_s12 + $0xf0] sm:$0xff] %vm267_vm3, %v738_v51  ;;  %v723_v55 = vadd.f32 %v1300_v34, %v687_v54 }
  0xe7   : > { %747 = vst.msk [vmem:[%s1305_s12 + $0x38] sm:$0xff] %vm267_vm3, %v715_v53  ;;  %v695_v56 = vld [vmem:[#allocation2 + $0xb8] sm:$0xff] }
  0xe8   : > { %755 = vst.msk [vmem:[%s1305_s12 + $0x78] sm:$0xff] %vm267_vm3, %v723_v55  ;;  %v731_v57 = vadd.f32 %v1300_v34, %v695_v56  ;;  %v703_v58 = vld [vmem:[#allocation2 + $0xf8] sm:$0xff] }
  0xe9   : > { %v739_v59 = vadd.f32 %v1300_v34, %v703_v58 }
  0xea   : > { %763 = vst.msk [vmem:[%s1305_s12 + $0xb8] sm:$0xff] %vm267_vm3, %v731_v57 }
  0xeb   : > { %771 = vst.msk [vmem:[%s1305_s12 + $0xf8] sm:$0xff] %vm267_vm3, %v739_v59 }
  0xec PF: > { %s15_s14 = sadd.s32 1, %s1147_s14   ;;  %s1448_s12 = smov %s1143_s13 }
  0xed   : > { %p12_p8 = scmp.ge.s32.totalorder %s15_s14, 18   ;;  %s1449_s13 = smov %s1451_s16 }
  0xef   :  { %14 = sbr.rel (!%p12_p8) target bundleno = 3 (0x3), region = 81 }
  0xf4   :  { %800 = vsyncpa [#allocation4], 1 }
  0xf5   :  { %802 = vsyncpa [#allocation4 + $0x1], 1 }
  0xf6   :  { %803 = vsyncpa [#allocation6], 1 }

</bundles_post_ra>
